<compile_context>
chip_gen: v7x
topology: tpu7x:2x2x1
jax: 0.10.0
libtpu: 0.0.40
codegen_flags: <defaults>
</compile_context>

<pallas_src>
import functools
import math

import jax
import jax.numpy as jnp
from jax import lax
from jax.experimental import pallas as pl
from jax.experimental.pallas import tpu as pltpu

COMPUTE_DTYPE = jnp.bfloat16   # MXU operand dtype (accumulation stays f32)
ACT_DTYPE = jnp.bfloat16       # inter-layer activation storage dtype
ACC_BUDGET = 128 * 1024        # target bytes for one f32 accumulator chunk


# ----------------------------------------------------------------------------
# Per-generation VMEM sizing
# ----------------------------------------------------------------------------
@functools.lru_cache(maxsize=1)
def _vmem_budget():
    """(tile-sizing working-set budget, compiler vmem limit) per TPU generation."""
    cap = 0
    try:
        cap = int(getattr(pltpu.get_tpu_info(), "vmem_capacity_bytes", 0) or 0)
    except Exception:
        cap = 0
    if cap >= 100 * 1024 * 1024:            # v5e / v6e: 128 MiB physical VMEM
        return 22 * 1024 * 1024, 96 * 1024 * 1024
    # v7x (64 MiB per TensorCore) or unknown: stay conservative.
    return 8 * 1024 * 1024, 32 * 1024 * 1024


# ----------------------------------------------------------------------------
# Pallas kernel: 3x3 conv (stride 1, pad 1) + bias + activation [+ fused skip]
# ----------------------------------------------------------------------------
def _fold_width(rows, cin, pair):
    """rows: (n, Wp, pair*cin) -> (n, Wp, (pair+2)*cin): the width taps needed
    by the 3-wide conv folded onto lanes, zero-padded at the width border."""
    n, Wp, _ = rows.shape
    zc = jnp.zeros((n, 1, cin), rows.dtype)
    if pair == 2:
        # lanes of `rows` already hold [x[2p] | x[2p+1]]; add x[2p-1], x[2p+2].
        if Wp > 1:
            left = jnp.concatenate([zc, rows[:, :Wp - 1, cin:]], axis=1)
            right = jnp.concatenate([rows[:, 1:, :cin], zc], axis=1)
        else:
            left = zc
            right = zc
        return jnp.concatenate([left, rows, right], axis=-1)    # (n, Wp, 4*cin)
    if Wp > 1:
        left = jnp.concatenate([zc, rows[:, :Wp - 1, :]], axis=1)
        right = jnp.concatenate([rows[:, 1:, :], zc], axis=1)
    else:
        left = zc
        right = zc
    return jnp.concatenate([left, rows, right], axis=-1)        # (n, Wp, 3*cin)


def _pack_weights(w, pair):
    """w: (3, 3, cin, cout) HWIO -> (3, K, Ncols) K-folded (and block-Toeplitz
    over the output-column pair when pair == 2)."""
    _, _, cin, cout = w.shape
    if pair == 1:
        return w.reshape(3, 3 * cin, cout)
    wz = jnp.zeros((3, 1, cin, cout), w.dtype)
    w_even = jnp.concatenate([w, wz], axis=1)     # taps [-1, 0, +1, +2] for y[2p]
    w_odd = jnp.concatenate([wz, w], axis=1)      # taps [-1, 0, +1, +2] for y[2p+1]
    wp = jnp.concatenate([w_even, w_odd], axis=-1)        # (3, 4, cin, 2*cout)
    return wp.reshape(3, 4 * cin, 2 * cout)


def _conv3x3_kernel(*refs, tile_h, Wp, cin, K, Ncols, pair, act, has_skip,
                    m_chunk, n_chunk):
    if has_skip:
        x_ref, xt_ref, xb_ref, w_ref, b_ref, s_ref, o_ref, col_ref = refs
    else:
        x_ref, xt_ref, xb_ref, w_ref, b_ref, o_ref, col_ref = refs
        s_ref = None

    cdt = w_ref.dtype
    ri = pl.program_id(1)
    n_row_tiles = pl.num_programs(1)

    cur = x_ref[...].astype(cdt)                        # (tile_h, Wp, pair*cin)
    top = xt_ref[...].astype(cdt) * (ri > 0).astype(cdt)              # halo row
    bot = xb_ref[...].astype(cdt) * (ri < n_row_tiles - 1).astype(cdt)

    # dx-folded im2col buffer: (tile_h + 2, Wp, K) in VMEM.
    col_ref[0:1] = _fold_width(top, cin, pair)
    col_ref[1:tile_h + 1] = _fold_width(cur, cin, pair)
    col_ref[tile_h + 1:tile_h + 2] = _fold_width(bot, cin, pair)

    bias = b_ref[...].astype(jnp.float32)               # (1, Ncols)
    n_m = tile_h // m_chunk

    # N-chunks outer (static, small) so the same weight block feeds every row
    # chunk; row chunks inner via fori_loop to bound accumulator live ranges.
    for n0 in range(0, Ncols, n_chunk):

        def row_chunk(s, carry, n0=n0):
            r0 = s * m_chunk
            acc = jnp.zeros((m_chunk * Wp, n_chunk), jnp.float32)
            for dy in range(3):                          # 3 matmuls of K x Ncols
                lhs = col_ref[pl.ds(r0 + dy, m_chunk)].reshape(m_chunk * Wp, K)
                acc += jnp.dot(lhs, w_ref[dy, :, n0:n0 + n_chunk],
                               preferred_element_type=jnp.float32)
            out = acc + bias[:, n0:n0 + n_chunk]
            if act == "lrelu":
                out = jnp.maximum(out, 0.1 * out)
            elif act == "relu":
                out = jnp.maximum(out, 0.0)
            if s_ref is not None:                        # fused residual / base add
                out = out + s_ref[pl.ds(r0, m_chunk), :,
                                  pl.ds(n0, n_chunk)].reshape(
                    m_chunk * Wp, n_chunk).astype(jnp.float32)
            o_ref[pl.ds(r0, m_chunk), :, pl.ds(n0, n_chunk)] = out.reshape(
                m_chunk, Wp, n_chunk).astype(o_ref.dtype)
            return carry

        lax.fori_loop(0, n_m, row_chunk, 0)


def _pick_tile_h(B, H, Wp, kin, K, Ncols, in_bytes, out_bytes, skip_bytes,
                 has_skip, budget):
    """Largest row tile (dividing H) whose padded-lane working set fits `budget`.
    When B == 1 the tile is capped at H//2 so v7x's two TCs both get work."""
    lane = lambda c: -(-c // 128) * 128
    sub = lambda c: -(-c // 8) * 8
    Wr = sub(Wp)
    w_bytes = 2 * 3 * sub(K) * lane(Ncols) * 2          # packed bf16 weights (x2 buf)
    max_th = min(H, 128)
    if B == 1 and H >= 4:
        max_th = min(max_th, H // 2)
    best = 1
    for th in range(1, max_th + 1):
        if H % th:
            continue
        vmem = (
            w_bytes
            + 2 * th * Wr * lane(kin) * in_bytes        # input block (double-buffered)
            + 4 * Wr * lane(kin) * in_bytes             # two 1-row halo blocks
            + 2 * th * Wr * lane(Ncols) * out_bytes     # output block
            + (th + 2) * Wr * lane(K) * 2               # im2col scratch (bf16)
        )
        if has_skip:
            vmem += 2 * th * Wr * lane(Ncols) * skip_bytes
        if vmem <= budget:
            best = th
    return best


def _pick_chunks(tile_h, Wp, Ncols):
    """Accumulator blocking: N in 128-lane multiples, rows so the f32
    accumulator (m_chunk*Wp, n_chunk) targets <= ACC_BUDGET (vreg file)."""
    n_opts = [Ncols] + [c for c in (512, 384, 256, 128)
                        if c < Ncols and Ncols % c == 0]
    n_chunk = n_opts[-1]
    for c in n_opts:                                    # descending
        if Wp * c * 4 <= ACC_BUDGET:
            n_chunk = c
            break
    m_max = max(1, ACC_BUDGET // (Wp * n_chunk * 4))
    m_chunk = 1
    for d in range(1, tile_h + 1):                      # largest divisor <= m_max
        if tile_h % d == 0 and d <= m_max:
            m_chunk = d
    return m_chunk, n_chunk


def conv3x3(x, w, b, act="none", skip=None, out_dtype=None):
    """x: (B, H, W, Cin) NHWC; w: (3, 3, Cin, Cout) HWIO; b: (Cout,).
    3x3 stride-1 pad-1 conv + bias + activation; optional fused `skip` add."""
    B, H, W, cin = x.shape
    cout = w.shape[-1]
    if out_dtype is None:
        out_dtype = x.dtype

    # Pair two adjacent output columns onto lanes: K = 4*Cin, N = 2*Cout.
    pair = 2 if W % 2 == 0 else 1
    Wp = W // pair
    kin = pair * cin
    K = (pair + 2) * cin
    Ncols = pair * cout

    wp = _pack_weights(w, pair).astype(COMPUTE_DTYPE)            # (3, K, Ncols)
    bp = jnp.tile(b.astype(jnp.float32), (pair,)).reshape(1, Ncols)

    # Row-major-identical (free) reshapes into the paired layout.
    xr = x.reshape(B, H, Wp, kin)
    skip_r = None if skip is None else skip.reshape(B, H, Wp, Ncols)

    budget, vmem_limit = _vmem_budget()
    in_b = jnp.dtype(x.dtype).itemsize
    out_b = jnp.dtype(out_dtype).itemsize
    skip_b = 0 if skip is None else jnp.dtype(skip.dtype).itemsize
    tile_h = _pick_tile_h(B, H, Wp, kin, K, Ncols, in_b, out_b, skip_b,
                          skip is not None, budget)
    n_row_tiles = H // tile_h
    m_chunk, n_chunk = _pick_chunks(tile_h, Wp, Ncols)

    def cur_map(bi, ri):
        return (bi, ri, 0, 0)

    def top_map(bi, ri):     # halo row above the tile (block size 1 along H)
        return (bi, jnp.maximum(ri * tile_h - 1, 0), 0, 0)

    def bot_map(bi, ri):     # halo row below the tile
        return (bi, jnp.minimum((ri + 1) * tile_h, H - 1), 0, 0)

    in_specs = [
        pl.BlockSpec((None, tile_h, Wp, kin), cur_map),
        pl.BlockSpec((None, 1, Wp, kin), top_map),
        pl.BlockSpec((None, 1, Wp, kin), bot_map),
        pl.BlockSpec((3, K, Ncols), lambda bi, ri: (0, 0, 0)),
        pl.BlockSpec((1, Ncols), lambda bi, ri: (0, 0)),
    ]
    args = [xr, xr, xr, wp, bp]
    if skip_r is not None:
        in_specs.append(pl.BlockSpec((None, tile_h, Wp, Ncols), cur_map))
        args.append(skip_r)

    kern = functools.partial(
        _conv3x3_kernel, tile_h=tile_h, Wp=Wp, cin=cin, K=K, Ncols=Ncols,
        pair=pair, act=act, has_skip=skip is not None,
        m_chunk=m_chunk, n_chunk=n_chunk)

    out = pl.pallas_call(
        kern,
        out_shape=jax.ShapeDtypeStruct((B, H, Wp, Ncols), out_dtype),
        grid=(B, n_row_tiles),
        in_specs=in_specs,
        out_specs=pl.BlockSpec((None, tile_h, Wp, Ncols), cur_map),
        scratch_shapes=[pltpu.VMEM((tile_h + 2, Wp, K), COMPUTE_DTYPE)],
        compiler_params=pltpu.CompilerParams(
            dimension_semantics=("parallel", "parallel"),
            vmem_limit_bytes=vmem_limit,
        ),
    )(*args)
    return out.reshape(B, H, W, cout)    # free row-major un-pairing


def conv3x3_ref(x, w, b, act="none", skip=None):
    """Pure-XLA f32 reference for the fused conv kernel (used for self-check)."""
    y = lax.conv_general_dilated(
        x.astype(jnp.float32), w.astype(jnp.float32), (1, 1), "SAME",
        dimension_numbers=("NHWC", "HWIO", "NHWC"))
    y = y + b.astype(jnp.float32)
    if act == "lrelu":
        y = jnp.where(y >= 0, y, 0.1 * y)
    elif act == "relu":
        y = jnp.maximum(y, 0.0)
    if skip is not None:
        y = y + skip.astype(jnp.float32)
    return y


# ----------------------------------------------------------------------------
# Plain-JAX glue: pixel shuffle, bilinear base upsample (align_corners=False)
# ----------------------------------------------------------------------------
def pixel_shuffle_nhwc(x, r):
    # PyTorch PixelShuffle semantics on NHWC: channel index = c*r*r + i*r + j
    B, H, W, Crr = x.shape
    C = Crr // (r * r)
    x = x.reshape(B, H, W, C, r, r)
    x = x.transpose(0, 1, 4, 2, 5, 3)  # (B, H, i, W, j, C)
    return x.reshape(B, H * r, W * r, C)


def _bilinear_matrix(in_size, out_size, dtype=jnp.float32):
    # Matches F.interpolate(mode='bilinear', align_corners=False) indexing.
    idx = (jnp.arange(out_size, dtype=jnp.float32) + 0.5) * (in_size / out_size) - 0.5
    idx = jnp.maximum(idx, 0.0)
    i0 = jnp.minimum(jnp.floor(idx).astype(jnp.int32), in_size - 1)
    i1 = jnp.minimum(i0 + 1, in_size - 1)
    lam = idx - i0.astype(jnp.float32)
    oh0 = jax.nn.one_hot(i0, in_size, dtype=dtype)
    oh1 = jax.nn.one_hot(i1, in_size, dtype=dtype)
    return oh0 * (1.0 - lam)[:, None] + oh1 * lam[:, None]    # (out, in)


def bilinear_resize_nhwc(x, scale):
    # Dense interpolation matmuls (MXU) instead of H/W gathers.
    B, H, W, C = x.shape
    Mh = _bilinear_matrix(H, H * scale)
    Mw = _bilinear_matrix(W, W * scale)
    return jnp.einsum("Oh,bhwc,Pw->bOPc", Mh, x.astype(jnp.float32), Mw)


# ----------------------------------------------------------------------------
# Parameters (deterministic synthetic init, Kaiming-style scaled by 0.1)
# ----------------------------------------------------------------------------
def init_conv(key, cin, cout, scale=0.1):
    std = math.sqrt(2.0 / (cin * 9)) * scale
    w = jax.random.normal(key, (3, 3, cin, cout), jnp.float32) * std
    b = jnp.zeros((cout,), jnp.float32)
    return w, b


def init_params(key, num_in_ch, num_out_ch, num_feat, num_block, upscale):
    n_keys = 3 + 2 * num_block + (2 if upscale == 4 else 1)
    keys = iter(jax.random.split(key, n_keys))
    p = {}
    p["conv_first"] = init_conv(next(keys), num_in_ch, num_feat)
    p["body"] = [
        (init_conv(next(keys), num_feat, num_feat),
         init_conv(next(keys), num_feat, num_feat))
        for _ in range(num_block)
    ]
    if upscale == 4:
        p["upconv1"] = init_conv(next(keys), num_feat, num_feat * 4)
        p["upconv2"] = init_conv(next(keys), num_feat, num_feat * 4)
    else:  # upscale in [2, 3]
        p["upconv1"] = init_conv(next(keys), num_feat, num_feat * upscale * upscale)
    p["conv_hr"] = init_conv(next(keys), num_feat, num_feat)
    p["conv_last"] = init_conv(next(keys), num_feat, num_out_ch)
    return p


# ----------------------------------------------------------------------------
# SRResNet forward
# ----------------------------------------------------------------------------
@functools.partial(jax.jit, static_argnames=("upscale",))
def srresnet_forward(x_nchw, params, upscale=4):
    x = jnp.transpose(x_nchw, (0, 2, 3, 1)).astype(jnp.float32)   # NCHW -> NHWC
    xb = x.astype(ACT_DTYPE)   # bf16 activations through the conv trunk

    # conv_first + LeakyReLU(0.1) fused in kernel
    feat = conv3x3(xb, *params["conv_first"], act="lrelu")

    # body: residual blocks (conv -> relu -> conv, fused skip add, res_scale=1)
    out = feat
    for (w1, b1), (w2, b2) in params["body"]:
        t = conv3x3(out, w1, b1, act="relu")
        out = conv3x3(t, w2, b2, act="none", skip=out)

    # upsampling trunk; lrelu(pixel_shuffle(conv(x))) == pixel_shuffle(lrelu(conv(x))),
    # so the LeakyReLU is fused into the conv kernel before the shuffle.
    if upscale == 4:
        out = pixel_shuffle_nhwc(conv3x3(out, *params["upconv1"], act="lrelu"), 2)
        out = pixel_shuffle_nhwc(conv3x3(out, *params["upconv2"], act="lrelu"), 2)
    else:  # upscale in [2, 3]
        out = pixel_shuffle_nhwc(conv3x3(out, *params["upconv1"], act="lrelu"), upscale)

    hr = conv3x3(out, *params["conv_hr"], act="lrelu")

    # bilinear skip (align_corners=False), fused into conv_last's epilogue
    base = bilinear_resize_nhwc(x, upscale)
    out = conv3x3(hr, *params["conv_last"], act="none", skip=base,
                  out_dtype=jnp.float32)

    return jnp.transpose(out, (0, 3, 1, 2))  # NHWC -> NCHW


# ----------------------------------------------------------------------------
if __name__ == "__main__":
    key = jax.random.PRNGKey(0)
    kp, kx, kc, kb = jax.random.split(key, 4)

    # --- standalone fused-conv self-check (exercises the pair fold, the
    #     lane-Toeplitz weight packing and the multi-row-tile halo path) ------
    cw, _ = init_conv(kc, 3, 8)
    cb = jax.random.normal(kb, (8,), jnp.float32) * 0.1
    xc = jax.random.normal(jax.random.fold_in(kc, 1),
                           (1, 16, 16, 3), jnp.float32).astype(ACT_DTYPE)
    got = conv3x3(xc, cw, cb, act="lrelu", out_dtype=jnp.float32)
    want = conv3x3_ref(xc, cw, cb, act="lrelu")
    err = float(jnp.max(jnp.abs(got - want)))
    ref_scale = float(jnp.max(jnp.abs(want)))
    assert err <= 0.05 * ref_scale + 1e-3, (err, ref_scale)

    # --- full SRResNet forward ----------------------------------------------
    B, num_in_ch, H, W = 2, 3, 8, 8
    num_out_ch, num_feat, num_block, upscale = 3, 32, 2, 4

    params = init_params(kp, num_in_ch, num_out_ch, num_feat, num_block, upscale)
    x = jax.random.normal(kx, (B, num_in_ch, H, W), jnp.float32)

    out = srresnet_forward(x, params, upscale=upscale)
    out = jax.block_until_ready(out)

    assert out.shape == (B, num_out_ch, H * upscale, W * upscale), out.shape
    assert out.dtype == jnp.float32
    assert bool(jnp.all(jnp.isfinite(out)))
    print("KERNEL_OK")
</pallas_src>

<mosaic_0001>
module attributes {stable_mosaic.version = 11 : i64} {
  func.func @_conv3x3_kernel(%arg0: i32, %arg1: i32, %arg2: memref<1x8x8x6xbf16, #tpu.memory_space<vmem>>, %arg3: memref<1x1x8x6xbf16, #tpu.memory_space<vmem>>, %arg4: memref<1x1x8x6xbf16, #tpu.memory_space<vmem>>, %arg5: memref<3x12x16xbf16, #tpu.memory_space<vmem>>, %arg6: memref<1x16xf32, #tpu.memory_space<vmem>>, %arg7: memref<1x8x8x16xf32, #tpu.memory_space<vmem>>, %arg8: memref<10x8x12xbf16, #tpu.memory_space<vmem>>) attributes {dimension_semantics = [#tpu.dimension_semantics<parallel>, #tpu.dimension_semantics<parallel>], iteration_bounds = array<i64: 1, 2>, scalar_prefetch = 0 : i64, scratch_operands = 1 : i64, tpu.core_type = #tpu.core_type<tc>, window_params = [{transform_indices = @transform_0, window_bounds = array<i64: 1, 8, 8, 6>}, {transform_indices = @transform_1, window_bounds = array<i64: 1, 1, 8, 6>}, {transform_indices = @transform_2, window_bounds = array<i64: 1, 1, 8, 6>}, {pipeline_mode = #tpu.pipeline_mode<synchronous>, transform_indices = @transform_3, window_bounds = array<i64: 3, 12, 16>}, {pipeline_mode = #tpu.pipeline_mode<synchronous>, transform_indices = @transform_4, window_bounds = array<i64: 1, 16>}, {transform_indices = @transform_5, window_bounds = array<i64: 1, 8, 8, 16>}]} {
    %c0 = arith.constant 0 : index
    %c0_0 = arith.constant 0 : index
    %c0_1 = arith.constant 0 : index
    %c0_2 = arith.constant 0 : index
    %0 = vector.load %arg2[%c0, %c0_0, %c0_1, %c0_2] : memref<1x8x8x6xbf16, #tpu.memory_space<vmem>>, vector<1x8x8x6xbf16>
    %1 = vector.shape_cast %0 : vector<1x8x8x6xbf16> to vector<8x8x6xbf16>
    %c0_3 = arith.constant 0 : index
    %c0_4 = arith.constant 0 : index
    %c0_5 = arith.constant 0 : index
    %c0_6 = arith.constant 0 : index
    %2 = vector.load %arg3[%c0_3, %c0_4, %c0_5, %c0_6] : memref<1x1x8x6xbf16, #tpu.memory_space<vmem>>, vector<1x1x8x6xbf16>
    %3 = vector.shape_cast %2 : vector<1x1x8x6xbf16> to vector<1x8x6xbf16>
    %c0_i32 = arith.constant 0 : i32
    %4 = arith.cmpi sgt, %arg1, %c0_i32 : i32
    %5 = arith.extui %4 : i1 to i32
    %6 = arith.sitofp %5 : i32 to f32
    %7 = arith.truncf %6 : f32 to bf16
    %8 = vector.broadcast %7 : bf16 to vector<1x8x6xbf16>
    %9 = arith.mulf %3, %8 : vector<1x8x6xbf16>
    %c0_7 = arith.constant 0 : index
    %c0_8 = arith.constant 0 : index
    %c0_9 = arith.constant 0 : index
    %c0_10 = arith.constant 0 : index
    %10 = vector.load %arg4[%c0_7, %c0_8, %c0_9, %c0_10] : memref<1x1x8x6xbf16, #tpu.memory_space<vmem>>, vector<1x1x8x6xbf16>
    %11 = vector.shape_cast %10 : vector<1x1x8x6xbf16> to vector<1x8x6xbf16>
    %c1_i32 = arith.constant 1 : i32
    %12 = arith.cmpi slt, %arg1, %c1_i32 : i32
    %13 = arith.extui %12 : i1 to i32
    %14 = arith.sitofp %13 : i32 to f32
    %15 = arith.truncf %14 : f32 to bf16
    %16 = vector.broadcast %15 : bf16 to vector<1x8x6xbf16>
    %17 = arith.mulf %11, %16 : vector<1x8x6xbf16>
    %cst = arith.constant 0.000000e+00 : bf16
    %18 = vector.broadcast %cst : bf16 to vector<1x1x3xbf16>
    %19 = vector.extract_strided_slice %9 {offsets = [0, 0, 3], sizes = [1, 7, 3], strides = [1, 1, 1]} : vector<1x8x6xbf16> to vector<1x7x3xbf16>
    %20 = tpu.concatenate %18, %19 in 1 : vector<1x1x3xbf16>, vector<1x7x3xbf16> -> vector<1x8x3xbf16>
    %21 = vector.extract_strided_slice %9 {offsets = [0, 1, 0], sizes = [1, 7, 3], strides = [1, 1, 1]} : vector<1x8x6xbf16> to vector<1x7x3xbf16>
    %22 = tpu.concatenate %21, %18 in 1 : vector<1x7x3xbf16>, vector<1x1x3xbf16> -> vector<1x8x3xbf16>
    %23 = tpu.concatenate %20, %9, %22 in 2 : vector<1x8x3xbf16>, vector<1x8x6xbf16>, vector<1x8x3xbf16> -> vector<1x8x12xbf16>
    %c0_11 = arith.constant 0 : index
    %c0_12 = arith.constant 0 : index
    %c0_13 = arith.constant 0 : index
    %24 = vector.load %arg8[%c0_11, %c0_12, %c0_13] : memref<10x8x12xbf16, #tpu.memory_space<vmem>>, vector<1x8x12xbf16>
    tpu.vector_store %arg8[%c0_11, %c0_12, %c0_13], %23 {strides = array<i32>} : memref<10x8x12xbf16, #tpu.memory_space<vmem>>, vector<1x8x12xbf16>,
    %cst_14 = arith.constant 0.000000e+00 : bf16
    %25 = vector.broadcast %cst_14 : bf16 to vector<8x1x3xbf16>
    %26 = vector.extract_strided_slice %1 {offsets = [0, 0, 3], sizes = [8, 7, 3], strides = [1, 1, 1]} : vector<8x8x6xbf16> to vector<8x7x3xbf16>
    %27 = tpu.concatenate %25, %26 in 1 : vector<8x1x3xbf16>, vector<8x7x3xbf16> -> vector<8x8x3xbf16>
    %28 = vector.extract_strided_slice %1 {offsets = [0, 1, 0], sizes = [8, 7, 3], strides = [1, 1, 1]} : vector<8x8x6xbf16> to vector<8x7x3xbf16>
    %29 = tpu.concatenate %28, %25 in 1 : vector<8x7x3xbf16>, vector<8x1x3xbf16> -> vector<8x8x3xbf16>
    %30 = tpu.concatenate %27, %1, %29 in 2 : vector<8x8x3xbf16>, vector<8x8x6xbf16>, vector<8x8x3xbf16> -> vector<8x8x12xbf16>
    %c1 = arith.constant 1 : index
    %c0_15 = arith.constant 0 : index
    %c0_16 = arith.constant 0 : index
    %31 = vector.load %arg8[%c1, %c0_15, %c0_16] : memref<10x8x12xbf16, #tpu.memory_space<vmem>>, vector<8x8x12xbf16>
    tpu.vector_store %arg8[%c1, %c0_15, %c0_16], %30 {strides = array<i32>} : memref<10x8x12xbf16, #tpu.memory_space<vmem>>, vector<8x8x12xbf16>,
    %cst_17 = arith.constant 0.000000e+00 : bf16
    %32 = vector.broadcast %cst_17 : bf16 to vector<1x1x3xbf16>
    %33 = vector.extract_strided_slice %17 {offsets = [0, 0, 3], sizes = [1, 7, 3], strides = [1, 1, 1]} : vector<1x8x6xbf16> to vector<1x7x3xbf16>
    %34 = tpu.concatenate %32, %33 in 1 : vector<1x1x3xbf16>, vector<1x7x3xbf16> -> vector<1x8x3xbf16>
    %35 = vector.extract_strided_slice %17 {offsets = [0, 1, 0], sizes = [1, 7, 3], strides = [1, 1, 1]} : vector<1x8x6xbf16> to vector<1x7x3xbf16>
    %36 = tpu.concatenate %35, %32 in 1 : vector<1x7x3xbf16>, vector<1x1x3xbf16> -> vector<1x8x3xbf16>
    %37 = tpu.concatenate %34, %17, %36 in 2 : vector<1x8x3xbf16>, vector<1x8x6xbf16>, vector<1x8x3xbf16> -> vector<1x8x12xbf16>
    %c9 = arith.constant 9 : index
    %c0_18 = arith.constant 0 : index
    %c0_19 = arith.constant 0 : index
    %38 = vector.load %arg8[%c9, %c0_18, %c0_19] : memref<10x8x12xbf16, #tpu.memory_space<vmem>>, vector<1x8x12xbf16>
    tpu.vector_store %arg8[%c9, %c0_18, %c0_19], %37 {strides = array<i32>} : memref<10x8x12xbf16, #tpu.memory_space<vmem>>, vector<1x8x12xbf16>,
    %c0_20 = arith.constant 0 : index
    %c0_21 = arith.constant 0 : index
    %39 = vector.load %arg6[%c0_20, %c0_21] : memref<1x16xf32, #tpu.memory_space<vmem>>, vector<1x16xf32>
    %c0_i32_22 = arith.constant 0 : i32
    %c8_i32 = arith.constant 8 : i32
    %40 = arith.muli %c0_i32_22, %c8_i32 : i32
    %cst_23 = arith.constant 0.000000e+00 : f32
    %41 = vector.broadcast %cst_23 : f32 to vector<64x16xf32>
    %c0_i32_24 = arith.constant 0 : i32
    %42 = arith.addi %40, %c0_i32_24 : i32
    %43 = arith.index_cast %42 : i32 to index
    %c0_25 = arith.constant 0 : index
    %c0_26 = arith.constant 0 : index
    %44 = vector.load %arg8[%43, %c0_25, %c0_26] : memref<10x8x12xbf16, #tpu.memory_space<vmem>>, vector<8x8x12xbf16>
    %45 = vector.shape_cast %44 : vector<8x8x12xbf16> to vector<64x12xbf16>
    %c0_27 = arith.constant 0 : index
    %c0_28 = arith.constant 0 : index
    %c0_29 = arith.constant 0 : index
    %46 = vector.load %arg5[%c0_27, %c0_28, %c0_29] : memref<3x12x16xbf16, #tpu.memory_space<vmem>>, vector<1x12x16xbf16>
    %47 = vector.shape_cast %46 : vector<1x12x16xbf16> to vector<12x16xbf16>
    %cst_30 = arith.constant dense<0.000000e+00> : vector<64x16xf32>
    %48 = tpu.matmul %45, %47, %cst_30 {dimension_numbers = #tpu.dot_dimension_numbers<[1], [0], [0], [1], [0, 0, 1, 1], [], []>} : vector<64x12xbf16>, vector<12x16xbf16>, vector<64x16xf32> -> vector<64x16xf32>
    %49 = arith.addf %41, %48 : vector<64x16xf32>
    %c1_i32_31 = arith.constant 1 : i32
    %50 = arith.addi %40, %c1_i32_31 : i32
    %51 = arith.index_cast %50 : i32 to index
    %c0_32 = arith.constant 0 : index
    %c0_33 = arith.constant 0 : index
    %52 = vector.load %arg8[%51, %c0_32, %c0_33] : memref<10x8x12xbf16, #tpu.memory_space<vmem>>, vector<8x8x12xbf16>
    %53 = vector.shape_cast %52 : vector<8x8x12xbf16> to vector<64x12xbf16>
    %c1_34 = arith.constant 1 : index
    %c0_35 = arith.constant 0 : index
    %c0_36 = arith.constant 0 : index
    %54 = vector.load %arg5[%c1_34, %c0_35, %c0_36] : memref<3x12x16xbf16, #tpu.memory_space<vmem>>, vector<1x12x16xbf16>
    %55 = vector.shape_cast %54 : vector<1x12x16xbf16> to vector<12x16xbf16>
    %cst_37 = arith.constant dense<0.000000e+00> : vector<64x16xf32>
    %56 = tpu.matmul %53, %55, %cst_37 {dimension_numbers = #tpu.dot_dimension_numbers<[1], [0], [0], [1], [0, 0, 1, 1], [], []>} : vector<64x12xbf16>, vector<12x16xbf16>, vector<64x16xf32> -> vector<64x16xf32>
    %57 = arith.addf %49, %56 : vector<64x16xf32>
    %c2_i32 = arith.constant 2 : i32
    %58 = arith.addi %40, %c2_i32 : i32
    %59 = arith.index_cast %58 : i32 to index
    %c0_38 = arith.constant 0 : index
    %c0_39 = arith.constant 0 : index
    %60 = vector.load %arg8[%59, %c0_38, %c0_39] : memref<10x8x12xbf16, #tpu.memory_space<vmem>>, vector<8x8x12xbf16>
    %61 = vector.shape_cast %60 : vector<8x8x12xbf16> to vector<64x12xbf16>
    %c2 = arith.constant 2 : index
    %c0_40 = arith.constant 0 : index
    %c0_41 = arith.constant 0 : index
    %62 = vector.load %arg5[%c2, %c0_40, %c0_41] : memref<3x12x16xbf16, #tpu.memory_space<vmem>>, vector<1x12x16xbf16>
    %63 = vector.shape_cast %62 : vector<1x12x16xbf16> to vector<12x16xbf16>
    %cst_42 = arith.constant dense<0.000000e+00> : vector<64x16xf32>
    %64 = tpu.matmul %61, %63, %cst_42 {dimension_numbers = #tpu.dot_dimension_numbers<[1], [0], [0], [1], [0, 0, 1, 1], [], []>} : vector<64x12xbf16>, vector<12x16xbf16>, vector<64x16xf32> -> vector<64x16xf32>
    %65 = arith.addf %57, %64 : vector<64x16xf32>
    %66 = vector.broadcast %39 : vector<1x16xf32> to vector<64x16xf32>
    %67 = arith.addf %65, %66 : vector<64x16xf32>
    %cst_43 = arith.constant 1.000000e-01 : f32
    %68 = vector.broadcast %cst_43 : f32 to vector<64x16xf32>
    %69 = arith.mulf %68, %67 : vector<64x16xf32>
    %70 = arith.maximumf %67, %69 : vector<64x16xf32>
    %71 = vector.shape_cast %70 : vector<64x16xf32> to vector<8x8x16xf32>
    %c0_44 = arith.constant 0 : index
    %72 = arith.index_cast %40 : i32 to index
    %c0_45 = arith.constant 0 : index
    %c0_46 = arith.constant 0 : index
    %73 = vector.load %arg7[%c0_44, %72, %c0_45, %c0_46] : memref<1x8x8x16xf32, #tpu.memory_space<vmem>>, vector<1x8x8x16xf32>
    %74 = vector.shape_cast %73 : vector<1x8x8x16xf32> to vector<8x8x16xf32>
    %75 = vector.shape_cast %71 : vector<8x8x16xf32> to vector<1x8x8x16xf32>
    tpu.vector_store %arg7[%c0_44, %72, %c0_45, %c0_46], %75 {strides = array<i32>} : memref<1x8x8x16xf32, #tpu.memory_space<vmem>>, vector<1x8x8x16xf32>,
    %c1_i32_47 = arith.constant 1 : i32
    return
  }
  func.func @transform_0(%arg0: i32, %arg1: i32) -> (i32, i32, i32, i32) {
    %c0_i32 = arith.constant 0 : i32
    %c0_i32_0 = arith.constant 0 : i32
    %c0_i32_1 = arith.constant 0 : i32
    return %arg0, %arg1, %c0_i32, %c0_i32_0 : i32, i32, i32, i32
  }
  func.func @transform_1(%arg0: i32, %arg1: i32) -> (i32, i32, i32, i32) {
    %c8_i32 = arith.constant 8 : i32
    %0 = arith.muli %arg1, %c8_i32 : i32
    %c1_i32 = arith.constant 1 : i32
    %1 = arith.subi %0, %c1_i32 : i32
    %c0_i32 = arith.constant 0 : i32
    %2 = arith.maxsi %1, %c0_i32 : i32
    %c0_i32_0 = arith.constant 0 : i32
    %c0_i32_1 = arith.constant 0 : i32
    %c0_i32_2 = arith.constant 0 : i32
    return %arg0, %2, %c0_i32_0, %c0_i32_1 : i32, i32, i32, i32
  }
  func.func @transform_2(%arg0: i32, %arg1: i32) -> (i32, i32, i32, i32) {
    %c1_i32 = arith.constant 1 : i32
    %0 = arith.addi %arg1, %c1_i32 : i32
    %c8_i32 = arith.constant 8 : i32
    %1 = arith.muli %0, %c8_i32 : i32
    %c15_i32 = arith.constant 15 : i32
    %2 = arith.minsi %1, %c15_i32 : i32
    %c0_i32 = arith.constant 0 : i32
    %c0_i32_0 = arith.constant 0 : i32
    %c0_i32_1 = arith.constant 0 : i32
    return %arg0, %2, %c0_i32, %c0_i32_0 : i32, i32, i32, i32
  }
  func.func @transform_3(%arg0: i32, %arg1: i32) -> (i32, i32, i32) {
    %c0_i32 = arith.constant 0 : i32
    %c0_i32_0 = arith.constant 0 : i32
    %c0_i32_1 = arith.constant 0 : i32
    %c0_i32_2 = arith.constant 0 : i32
    return %c0_i32, %c0_i32_0, %c0_i32_1 : i32, i32, i32
  }
  func.func @transform_4(%arg0: i32, %arg1: i32) -> (i32, i32) {
    %c0_i32 = arith.constant 0 : i32
    %c0_i32_0 = arith.constant 0 : i32
    %c0_i32_1 = arith.constant 0 : i32
    return %c0_i32, %c0_i32_0 : i32, i32
  }
  func.func @transform_5(%arg0: i32, %arg1: i32) -> (i32, i32, i32, i32) {
    %c0_i32 = arith.constant 0 : i32
    %c0_i32_0 = arith.constant 0 : i32
    %c0_i32_1 = arith.constant 0 : i32
    return %arg0, %arg1, %c0_i32, %c0_i32_0 : i32, i32, i32, i32
  }
}

</mosaic_0001>

<bundles_post_ra>
// kernel: tpu_custom_call.1
= control target key start
LH: loop header
LB: loop body
LE: loop exit
PB: predicated region body
PF: predicated region fallthrough
CT: control target
= control target key end

     0   :  { %10 = vsyncpa [#allocation4], 0  ;;  %s1974_s0 = inlined_call_operand.vmem [shape: bf16[1,16,8,6], index: 0, kind: input, shape index: {}]   ;;  %s1975_s1 = inlined_call_operand.vmem [shape: bf16[1,16,8,6], index: 1, kind: input, shape index: {}]   ;;  %s1976_s2 = inlined_call_operand.vmem [shape: bf16[1,16,8,6], index: 2, kind: input, shape index: {}]   ;;  %s1977_s3 = inlined_call_operand.vmem [shape: bf16[3,12,16], index: 3, kind: input, shape index: {}]   ;;  %s1978_s4 = inlined_call_operand.vmem [shape: f32[1,16], index: 4, kind: input, shape index: {}]   ;;  %s1979_s5 = inlined_call_operand.hbm [shape: f32[1,16,8,16], index: 5, kind: output, shape index: {}]  }
   0x1   :  { %12 = vsyncpa [#allocation4 + $0x1], 0  ;;  %s1608_s18 = smov 0   ;;  %s1610_s19 = smov 0  }
   0x2   :  { %s1612_s20 = smov 0   ;;  %s1614_s21 = smov 0  }
   0x3   :  { %s1616_s22 = smov 0   ;;  %s1618_s23 = smov 0  }
   0x4 LB: > { %s1259_s24 = sadd.s32 4294967295, %s1570_s23   ;;  %s1260_s25 = sadd.s32 4294967294, %s1570_s23   ;;  %s1570_s23 = sphi %s1618_s23, %s18_s23   ;;  %s1566_s22 = sphi %s1616_s22, %s1991_s22   ;;  %s1562_s21 = sphi %s1614_s21, %s1990_s21   ;;  %s1558_s20 = sphi %s1612_s20, %s1989_s20   ;;  %s1554_s19 = sphi %s1610_s19, %s1988_s19   ;;  %s1550_s18 = sphi %s1608_s18, %s1987_s18  }
   0x5   : > { %s27_s26 = sadd.s32 1, %s1566_s22  ;;  %s181_s27 = sadd.s32 1, %s1558_s20 }
   0x6   : > { %p28_p0 = scmp.ge.s32.totalorder %s27_s26, 2  ;;  %p191_p1 = scmp.ne.s32.totalorder %s1558_s20, %s1554_s19 }
   0x7   : > { %p192_p2 = scmp.eq.s32.totalorder %s1259_s24, 1  ;;  %p197_p3 = scmp.ne.s32.totalorder %s1554_s19, %s1550_s18 }
   0x8   : > { %s1993_s26 = smov (%p28_p0, %s27_s26), 0  ;;  %p198_p5 = scmp.eq.s32.totalorder %s1260_s25, 1 }
   0x9   : > { %p1648_p4 = por %p192_p2, %p191_p1  ;;  %s177_s29 = ssub.s32 %s1566_s22, %s1993_s26 }
   0xa   : > { %p1269_p6 = scmp.ge.s32.totalorder %s1570_s23, 1  ;;  %p179_p7 = scmp.eq.s32.totalorder %s177_s29, 0 }
   0xb   : > { %p1655_p8 = por %p198_p5, %p197_p3  ;;  %p273_p9 = scmp.lt.s32.totalorder %s1570_s23, 3 }
   0xc   : > { %s1661_s6 = scalar_select %p179_p7, %s1558_s20, %s181_s27  }
   0xd   : > { %p274_p10 = pnand %p1269_p6, %p273_p9 }
   0xe   : > { %s1664_s7 = sshll.u32 (!%p274_p10), %s1562_s21, 3  ;;  %p382_p0 = scmp.gt.s32.totalorder (!%p274_p10), %s1562_s21, 0  ;;  %vm439_vm0 = vcmask (!%p274_p10), 1043456   ;;  %vm440_vm1 = vsmask.f32 (!%p274_p10), 3328  ;;  %vm790_vm3 = vcmask (!%p274_p10), 1045504  }
   0xf   : > { %277 = sbr.rel (%p274_p10) target bundleno = 454 (0x1c6), region = 40  ;;  %p332_p11 = scmp.lt.s32.totalorder (!%p274_p10), %s1664_s7, 15  ;;  %vm1697_vm2 = vmand (!%p274_p10), %vm439_vm0, %vm440_vm1  ;;  %v1478_v38 = vld [vmem:[%s1977_s3 + $0x8] sm:$0x3f] (!%p274_p10)   ;;  %v1480_v52 = vld [vmem:[%s1977_s3] sm:$0x3f] (!%p274_p10)  }
  0x10   : > { %s1274_s8 = sadd.s32 (!%p274_p10), 4294967295, %s1664_s7  ;;  %s1572_s14 = smov (!%p274_p10), 3   ;;  %1405 = vmatprep.subr.msk.bf16.mxu1 (!%p274_p10), %vm790_vm3, %v1478_v38  ;;  %v792_v43 = vsel (!%p274_p10), %vm790_vm3, %v1478_v38, 0  ;;  %1406 = vmatprep.subr.msk.bf16.mxu0 (!%p274_p10), %vm790_vm3, %v1480_v52  ;;  %v1770_v58 = vsel (!%p274_p10), %vm790_vm3, %v1480_v52, 0  ;;  %vm432_vm4 = vcmask (!%p274_p10), 1040384   ;;  %vm448_vm7 = vcmask (!%p274_p10), 23552  }
  0x11   : > { %p341_p12 = scmp.gt.s32.totalorder (!%p274_p10), %s1274_s8, 0  ;;  %p1275_p13 = scmp.lt.s32.totalorder (!%p274_p10), %s1274_s8, 15  ;;  %1358 = vmatpush3.bf16.msra.mxu1 (!%p274_p10), %v792_v43  ;;  %1368 = vmatpush3.bf16.msra.mxu0 (!%p274_p10), %v1770_v58  ;;  %vm433_vm5 = vsmask.f32 (!%p274_p10), 256  ;;  %vm452_vm8 = vcmask (!%p274_p10), 72704   ;;  %vm456_vm9 = vcmask (!%p274_p10), 93184  }
  0x12   : > { %s1573_s27 = smov (!%p274_p10), 125   ;;  %p401_p3 = scmp.lt.s32.totalorder (!%p274_p10), %s1562_s21, 1  ;;  %1407 = vmatprep.subr.msk.bf16.mxu1 (!%p274_p10), %vm790_vm3, %v1480_v52  ;;  %vm1825_vm6 = vmand (!%p274_p10), %vm432_vm4, %vm433_vm5  ;;  %vm777_vm10 = vcmask (!%p274_p10), 97280   ;;  %vm1119_vm11 = vcmask (!%p274_p10), 130048  }
  0x16   : > { %s333_s9 = scalar_select %p332_p11, %s1664_s7, 15 }
  0x17   : > { %s342_s15 = scalar_select %p341_p12, %s1274_s8, 0 }
  0x18   : > { %s1272_s10 = sshll.u32 %s333_s9, 2 }
  0x19   : > { %s1672_s13 = scalar_lea.vmem %s1974_s0, %s1272_s10  ;;  %s1995_s15 = smov (!%p1275_p13, %s342_s15), 15 }
  0x1a   : > { %v1469_v0 = vld [vmem:[%s1672_s13 + $0x4] ss:$0 sps:$4 sm:$0xff]   ;;  %v1470_v1 = vld [vmem:[%s1672_s13] ss:$0 sps:$4 sm:$0xff]   ;;  %v1678_v2 = vld [vmem:[%s1672_s13 + $0x8] ss:$0 sps:$4 sm:$0xff]  }
  0x1b   : > { %604 = vrot.lane.b32.xlu1 %v1469_v0, %s1572_s14  ;;  %v1472_v3 = vld [vmem:[%s1672_s13 + $0xc] ss:$0 sps:$4 sm:$0xff]   ;;  %v490_v4 = vshrl.u32 %v1469_v0, 16  ;;  %v493_v5 = vshll.u32 %v1469_v0, 16  ;;  %602 = vrot.lane.b32.xlu0 %v1470_v1, %s1572_s14  ;;  %v483_v6 = vshrl.u32 %v1470_v1, 16  ;;  %v486_v7 = vshll.u32 %v1470_v1, 16 }
  0x1c   : > { %v497_v8 = vshrl.u32 %v1678_v2, 16  ;;  %v504_v10 = vshrl.u32 %v1472_v3, 16  ;;  %s383_s16 = scalar_select %p382_p0, 1, 0  ;;  %v507_v14 = vshll.u32 %v1472_v3, 16  ;;  %v500_v17 = vshll.u32 %v1678_v2, 16 }
  0x1d   : > { %v492_v9 = vrot.slane %v490_v4, 7  ;;  %v485_v11 = vrot.slane %v483_v6, 7  ;;  %v570_v18 = vrot.slane %v486_v7, 1  ;;  %v572_v19 = vrot.slane %v493_v5, 1  ;;  %s1280_s24 = sshll.u32 %s1995_s15, 2  ;;  %s1340_s10 = sadd.s32 8, %s1664_s7 }
  0x1e   : > { %v506_v13 = vrot.slane %v504_v10, 7  ;;  %s384_s17 = scvt.s32.f32 %s383_s16  ;;  %v499_v16 = vrot.slane %v497_v8, 7  ;;  %v576_v25 = vrot.slane %v507_v14, 1  ;;  %s350_s15 = scalar_lea.vmem %s1975_s1, %s1280_s24  ;;  %v1711_v27 = vld [vmem:[%s1672_s13 + $0x10] ss:$0 sps:$4 sm:$0xff]   ;;  %v574_v31 = vrot.slane %v500_v17, 1 }
  0x1f   : > { %606 = vrot.lane.b32.xlu1 %v1678_v2, %s1572_s14  ;;  %v495_v12 = vor.u32 %v493_v5, %v492_v9  ;;  %608 = vrot.lane.b32.xlu0 %v1472_v3, %s1572_s14  ;;  %v488_v15 = vor.u32 %v486_v7, %v485_v11  ;;  %v571_v22 = vor.u32 %v570_v18, %v483_v6  ;;  %p1713_p2 = scmp.lt.s32.totalorder %s1340_s10, 15  ;;  %v381_v30 = vld [vmem:[%s350_s15] sm:$0xf]  ;;  %s1574_s24 = smov 9   ;;  %v511_v33 = vshrl.u32 %v1711_v27, 16 }
  0x20   : > { %s387_s25 = sshrl.u32 %s384_s17, 16  ;;  %v509_v20 = vor.u32 %v507_v14, %v506_v13  ;;  %p386_p1 = scmp.ne.f32.partialorder %s384_s17, %s384_s17  ;;  %v502_v21 = vor.u32 %v500_v17, %v499_v16  ;;  %v573_v24 = vor.u32 %v572_v19, %v490_v4  ;;  %v577_v29 = vor.u32 %v576_v25, %v504_v10  ;;  %v1730_v36 = vld [vmem:[%s1672_s13 + $0x18] ss:$0 sps:$4 sm:$0xff]   ;;  %v1738_v40 = vld [vmem:[%s1672_s13 + $0x14] ss:$0 sps:$4 sm:$0xff]  }
  0x21   : > { %s388_s29 = sand.u32 1, %s387_s25  ;;  %v594_v26 = vsel %vm1697_vm2, %v571_v22, 0  ;;  %s1999_s10 = smov (!%p1713_p2, %s1340_s10), 15  ;;  %v575_v37 = vor.u32 %v574_v31, %v497_v8  ;;  %v513_v41 = vrot.slane %v511_v33, 7  ;;  %v514_v42 = vshll.u32 %v1711_v27, 16 }
  0x22   : > { %s389_s8 = sadd.s32 32767, %s388_s29  ;;  %v595_v28 = vsel %vm1697_vm2, %v573_v24, 0  ;;  %v597_v35 = vsel %vm1697_vm2, %v577_v29, 0  ;;  %s2001_s10 = smov (!%p1713_p2, %s1999_s10), 15  ;;  %v525_v46 = vshrl.u32 %v1730_v36, 16  ;;  %v518_v51 = vshrl.u32 %v1738_v40, 16 }
  0x23   : > { %540 = vrot.lane.b32.xlu1 %v495_v12, %s1573_s27  ;;  %538 = vrot.lane.b32.xlu0 %v488_v15, %s1573_s27  ;;  %s390_s9 = sadd.s32 %s389_s8, %s384_s17  ;;  %v596_v47 = vsel %vm1697_vm2, %v575_v37, 0  ;;  %v1757_v48 = vld [vmem:[%s1672_s13 + $0x1c] ss:$0 sps:$4 sm:$0xff]   ;;  %v516_v53 = vor.u32 %v514_v42, %v513_v41  ;;  %v528_v54 = vshll.u32 %v1730_v36, 16  ;;  %v521_v60 = vshll.u32 %v1738_v40, 16 }
  0x24   : > { %s391_s16 = sand.u32 4294901760, %s390_s9  ;;  %v527_v57 = vrot.slane %v525_v46, 7  ;;  %v520_v59 = vrot.slane %v518_v51, 7  ;;  %v532_v61 = vshrl.u32 %v1757_v48, 16  ;;  %v535_v3 = vshll.u32 %v1757_v48, 16 }
  0x25   : > { %s1997_s16 = smov (%p386_p1, %s391_s16), 2143289344  ;;  %v578_v6 = vrot.slane %v514_v42, 1  ;;  %v582_v10 = vrot.slane %v528_v54, 1  ;;  %v1484_v11 = vld [vmem:[%s1977_s3 + $0x10] sm:$0x3f]   ;;  %v580_v12 = vrot.slane %v521_v60, 1 }
  0x26   : > { %s394_s7 = sshrl.u32 %s1997_s16, 16  ;;  %v530_v63 = vor.u32 %v528_v54, %v527_v57  ;;  %v523_v1 = vor.u32 %v521_v60, %v520_v59  ;;  %v534_v2 = vrot.slane %v532_v61, 7  ;;  %1408 = vmatprep.subr.msk.bf16.mxu0 %vm790_vm3, %v1484_v11  ;;  %v1800_v13 = vsel %vm790_vm3, %v1484_v11, 0 }
  0x27   : > { %544 = vrot.lane.b32.xlu1 %v509_v20, %s1573_s27  ;;  %542 = vrot.lane.b32.xlu0 %v502_v21, %s1573_s27  ;;  %s395_s17 = sshll.u32 %s394_s7, 16  ;;  %v579_v9 = vor.u32 %v578_v6, %v511_v33  ;;  %v583_v16 = vor.u32 %v582_v10, %v525_v46  ;;  %v581_v18 = vor.u32 %v580_v12, %v518_v51  ;;  %v584_v19 = vrot.slane %v535_v3, 1 }
  0x28   : > { %s396_s29 = sor.u32 %s395_s17, %s394_s7  ;;  %v537_v7 = vor.u32 %v535_v3, %v534_v2 }
  0x29   : > { %v397_v32 = vstv %s396_s29  ;;  %s402_s8 = scalar_select %p401_p3, 1, 0  ;;  %v598_v15 = vsel %vm1697_vm2, %v579_v9, 0  ;;  %v600_v21 = vsel %vm1697_vm2, %v583_v16, 0  ;;  %v599_v24 = vsel %vm1697_vm2, %v581_v18, 0 }
  0x2a   : > { %v399_v34 = vmul.bf16 %v397_v32, %v381_v30  ;;  %s1285_s29 = sshll.u32 %s2001_s10, 2  ;;  %v585_v25 = vor.u32 %v584_v19, %v532_v61 }
  0x2b   : > { %626 = vrot.lane.b32.xlu1 %v594_v26, %s1574_s24  ;;  %628 = vrot.lane.b32.xlu0 %v595_v28, %s1574_s24  ;;  %s1740_s12 = scvt.s32.f32 %s402_s8  ;;  %s366_s11 = scalar_lea.vmem %s1976_s2, %s1285_s29 }
  0x2c   : > { %v1286_v39 = vcombine.low %v399_v34, %v399_v34  ;;  %v400_v0 = vld [vmem:[%s366_s11] sm:$0xf]  ;;  %v601_v28 = vsel %vm1697_vm2, %v585_v25, 0 }
  0x2d   : > { %s406_s15 = sshrl.u32 %s1740_s12, 16  ;;  %p405_p5 = scmp.ne.f32.partialorder %s1740_s12, %s1740_s12 }
  0x2e   : > { %v423_v44 = vshrl.u32 %v1286_v39, 16  ;;  %v426_v45 = vshll.u32 %v1286_v39, 16  ;;  %s407_s16 = sand.u32 1, %s406_s15 }
  0x2f   : > { %632 = vrot.lane.b32.xlu0 %v597_v35, %s1574_s24  ;;  %443 = vrot.lane.b32.xlu1 %v1286_v39, %s1572_s14  ;;  %s408_s25 = sadd.s32 32767, %s407_s16 }
  0x30   : > { %v425_v49 = vrot.slane %v423_v44, 7  ;;  %v436_v50 = vrot.slane %v426_v45, 1  ;;  %s409_s13 = sadd.s32 %s408_s25, %s1740_s12 }
  0x31   : > { %s410_s8 = sand.u32 4294901760, %s409_s13  ;;  %s1341_s13 = sshll.u32 %s1562_s21, 10 }
  0x32   : > { %v428_v55 = vor.u32 %v426_v45, %v425_v49  ;;  %v437_v56 = vor.u32 %v436_v50, %v423_v44  ;;  %s2003_s8 = smov (%p405_p5, %s410_s8), 2143289344  ;;  %s1916_s11 = scalar_lea.hbm %s1979_s5, %s1341_s13 }
  0x33   : > { %630 = vrot.lane.b32.xlu1 %v596_v47, %s1574_s24  ;;  %s413_s12 = sshrl.u32 %s2003_s8, 16 }
  0x34   : > { %429 = vrot.lane.b32.xlu0 %v428_v55, %s1573_s27  ;;  %v442_v62 = vsel %vm1697_vm2, %v437_v56, 0  ;;  %s414_s15 = sshll.u32 %s413_s12, 16 }
  0x35   : > { %s415_s16 = sor.u32 %s414_s15, %s413_s12  ;;  %s1575_s15 = smov [#allocation3]  }
  0x36   : > { %v416_v4 = vstv %s415_s16  ;;  %s1496_s16 = sshll.u32 %s1575_s15, 4  ;;  %s1497_s16 = int_to_ptr.vmem [resolvable:$false] %s1496_s16 }
  0x37   : > { %546 = vrot.lane.b32.xlu1 %v516_v53, %s1573_s27  ;;  %v418_v5 = vmul.bf16 %v416_v4, %v400_v0  ;;  %s1498_s25 = scalar_lea.vmem %s1497_s16, 2048 }
  0x38   : > { %446 = vrot.lane.b32.xlu0 %v442_v62, %s1574_s24 }
  0x39   : > { %v1295_v8 = vcombine.low %v418_v5, %v418_v5 }
  0x3b   : > { %550 = vrot.lane.b32.xlu1 %v530_v63, %s1573_s27  ;;  %v703_v14 = vshrl.u32 %v1295_v8, 16  ;;  %v706_v17 = vshll.u32 %v1295_v8, 16 }
  0x3c   : > { %548 = vrot.lane.b32.xlu0 %v523_v1, %s1573_s27 }
  0x3d   : > { %v705_v20 = vrot.slane %v703_v14, 7  ;;  %v713_v22 = vrot.slane %v706_v17, 1 }
  0x3f   : > { %610 = vrot.lane.b32.xlu1 %v1711_v27, %s1572_s14  ;;  %v708_v26 = vor.u32 %v706_v17, %v705_v20  ;;  %v714_v27 = vor.u32 %v713_v22, %v703_v14 }
  0x40   : > { %552 = vrot.lane.b32.xlu0 %v537_v7, %s1573_s27 }
  0x41   : > { %v716_v29 = vsel %vm1697_vm2, %v714_v27, 0 }
  0x43   : > { %614 = vrot.lane.b32.xlu1 %v1730_v36, %s1572_s14 }
  0x44   : > { %612 = vrot.lane.b32.xlu0 %v1738_v40, %s1572_s14 }
  0x47   : > { %634 = vrot.lane.b32.xlu1 %v598_v15, %s1574_s24 }
  0x48   : > { %616 = vrot.lane.b32.xlu0 %v1757_v48, %s1572_s14 }
  0x4b   : > { %638 = vrot.lane.b32.xlu1 %v600_v21, %s1574_s24 }
  0x4c   : > { %636 = vrot.lane.b32.xlu0 %v599_v24, %s1574_s24 }
  0x4f   : > { %709 = vrot.lane.b32.xlu1 %v708_v26, %s1573_s27 }
  0x50   : > { %640 = vrot.lane.b32.xlu0 %v601_v28, %s1574_s24 }
  0x53   : > { %720 = vrot.lane.b32.xlu1 %v716_v29, %s1574_s24 }
  0x54   : > { %717 = vrot.lane.b32.xlu0 %v1295_v8, %s1572_s14  ;;  %s326_s14 = sand.u32 1, %s1554_s19  }
  0x55   : > { %s1270_s17 = sshll.u32 %s326_s14, 6  ;;  %s1928_s21 = scalar_lea.sflag [#allocation4], %s326_s14 }
  0x56   : > { %s1899_s29 = scalar_lea.vmem [#allocation3], %s1270_s17 }
  0x57   : > { %s1144_s8 = sshll.u32 %s1899_s29, 4  ;;  %s1918_s8 = int_to_ptr.vmem [resolvable:$true] %s1144_s8 }
  0x58   : > { %s1492_s12 = scalar_lea.vmem %s1918_s8, 1024  ;;  %p1499_p10 = scmp.lt.s32.totalorder %s1918_s8, %s1497_s16 }
  0x59   : > { %p1493_p6 = scmp.ne.s32.totalorder %s1918_s8, %s1492_s12  ;;  %p1500_p11 = scmp.lt.s32.totalorder %s1498_s25, %s1492_s12 }
  0x5b   : > { %p1494_p7 = pnand %p1493_p6, %p1648_p4  ;;  %p1501_p12 = por %p1500_p11, %p1499_p10 }
  0x5d   : > { %p1495_p9 = pneg %p1494_p7 }
  0x5f   : > { %p1502_p13 = pnand %p1501_p12, %p1495_p9 }
  0x8d   : > { %v605_v30 = vpop.permute.xlu1 %604  ;;  %v603_v31 = vpop.permute.xlu0 %602 }
  0x91   : > { %v607_v32 = vpop.permute.xlu1 %606  ;;  %v609_v33 = vpop.permute.xlu0 %608 }
  0x95   : > { %v541_v34 = vpop.permute.xlu1 %540  ;;  %v539_v35 = vpop.permute.xlu0 %538 }
  0x96   : > { %v562_v37 = vsel %vm1825_vm6, 0, %v539_v35  ;;  %v563_v39 = vsel %vm1825_vm6, 0, %v541_v34 }
  0x97   : > { %v644_v40 = vsel %vm448_vm7, %v562_v37, %v603_v31  ;;  %v647_v42 = vsel %vm448_vm7, %v563_v39, %v605_v30 }
  0x99   : > { %v545_v23 = vpop.permute.xlu1 %544  ;;  %v543_v38 = vpop.permute.xlu0 %542 }
  0x9a   : > { %v565_v45 = vsel %vm1825_vm6, 0, %v545_v23  ;;  %v564_v51 = vsel %vm1825_vm6, 0, %v543_v38 }
  0x9b   : > { %v653_v47 = vsel %vm448_vm7, %v565_v45, %v609_v33  ;;  %v650_v52 = vsel %vm448_vm7, %v564_v51, %v607_v32 }
  0x9d   : > { %v627_v41 = vpop.permute.xlu1 %626  ;;  %v629_v44 = vpop.permute.xlu0 %628 }
  0x9e   : > { %v667_v43 = vsel %vm452_vm8, %v644_v40, %v627_v41  ;;  %v670_v46 = vsel %vm452_vm8, %v647_v42, %v629_v44  ;;  %v1327_v42 = vld [vmem:[%s1978_s4] ss:$0 sm:$0xff] }
  0x9f   : > { %691 = vst.msk [vmem:[#allocation2 + $0x4] sm:$0xf] %vm456_vm9, %v667_v43  ;;  %692 = vst.msk [vmem:[#allocation2 + $0x8] sm:$0xf] %vm456_vm9, %v670_v46 }
  0xa1   : > { %v633_v48 = vpop.permute.xlu0 %632  ;;  %v444_v49 = vpop.permute.xlu1 %443 }
  0xa2   : > { %v676_v50 = vsel %vm452_vm8, %v653_v47, %v633_v48 }
  0xa3   : > { %694 = vst.msk [vmem:[#allocation2 + $0x10] sm:$0xf] %vm456_vm9, %v676_v50 }
  0xa5   : > { %v631_v53 = vpop.permute.xlu1 %630 }
  0xa6   : > { %v1477_v54 = vld [vmem:[#allocation2 + $0x4] sm:$0xff]   ;;  %v673_v55 = vsel %vm452_vm8, %v650_v52, %v631_v53  ;;  %v430_v56 = vpop.permute.xlu0 %429 }
  0xa7   : > { %693 = vst.msk [vmem:[#allocation2 + $0xc] sm:$0xf] %vm456_vm9, %v673_v55  ;;  %1359 = vmatprep.mubr.msk.bf16.mxu1 %vm777_vm10, %v1477_v54  ;;  %v435_v57 = vsel %vm1825_vm6, 0, %v430_v56 }
  0xa8   : > { %v451_v60 = vsel %vm448_vm7, %v435_v57, %v444_v49 }
  0xa9   : > { %v547_v59 = vpop.permute.xlu1 %546 }
  0xaa   : > { %v447_v61 = vpop.permute.xlu0 %446  ;;  %v566_v9 = vsel %vm1825_vm6, 0, %v547_v59 }
  0xab   : > { %v454_v62 = vsel %vm452_vm8, %v451_v60, %v447_v61 }
  0xac   : > { %457 = vst.msk [vmem:[#allocation2] sm:$0xf] %vm456_vm9, %v454_v62 }
  0xad   : > { %v551_v63 = vpop.permute.xlu1 %550 }
  0xae   : > { %v1479_v0 = vld [vmem:[#allocation2 + $0xc] sm:$0xff]   ;;  %v549_v1 = vpop.permute.xlu0 %548  ;;  %v568_v14 = vsel %vm1825_vm6, 0, %v551_v63 }
  0xaf   : > { %1360 = vmatmul.mubr.msk.bf16.vlgmr.msra.gmra.mrb[0].mxu1 %vm777_vm10, %v1479_v0  ;;  %v1482_v6 = vld [vmem:[#allocation2 + $0x8] sm:$0xff]   ;;  %v567_v17 = vsel %vm1825_vm6, 0, %v549_v1 }
  0xb0   : > { %1388 = vmatpush3.bf16.msra.mxu1 %v1770_v58  ;;  %v1483_v7 = vld [vmem:[#allocation2 + $0x8] sm:$0xff]  }
  0xb1   : > { %v611_v2 = vpop.permute.xlu1 %610 }
  0xb2   : > { %v553_v3 = vpop.permute.xlu0 %552  ;;  %v656_v10 = vsel %vm448_vm7, %v566_v9, %v611_v2 }
  0xb3   : > { %v1481_v4 = vld [vmem:[#allocation2] sm:$0xff]   ;;  %v569_v22 = vsel %vm1825_vm6, 0, %v553_v3 }
  0xb4   : > { %1369 = vmatprep.mubr.msk.bf16.mxu0 %vm777_vm10, %v1481_v4 }
  0xb5   : > { %v615_v5 = vpop.permute.xlu1 %614  ;;  %1370 = vmatmul.mubr.msk.bf16.vlgmr.msra.gmra.mrb[0].mxu0 %vm777_vm10, %v1482_v6 }
  0xb6   : > { %v613_v8 = vpop.permute.xlu0 %612  ;;  %1379 = vmatprep.mubr.msk.bf16.mxu0 %vm777_vm10, %v1483_v7  ;;  %1378 = vmatpush3.bf16.msra.mxu0 %v1800_v13  ;;  %v662_v15 = vsel %vm448_vm7, %v568_v14, %v615_v5 }
  0xb7   : > { %v659_v13 = vsel %vm448_vm7, %v567_v17, %v613_v8 }
  0xb9   : > { %v635_v58 = vpop.permute.xlu1 %634 }
  0xba   : > { %v679_v11 = vsel %vm452_vm8, %v656_v10, %v635_v58  ;;  %v617_v12 = vpop.permute.xlu0 %616 }
  0xbb   : > { %695 = vst.msk [vmem:[#allocation2 + $0x14] sm:$0xf] %vm456_vm9, %v679_v11  ;;  %v665_v25 = vsel %vm448_vm7, %v569_v22, %v617_v12 }
  0xbd   : > { %v639_v16 = vpop.permute.xlu1 %638 }
  0xbe   : > { %v685_v18 = vsel %vm452_vm8, %v662_v15, %v639_v16  ;;  %v637_v19 = vpop.permute.xlu0 %636 }
  0xbf   : > { %697 = vst.msk [vmem:[#allocation2 + $0x1c] sm:$0xf] %vm456_vm9, %v685_v18  ;;  %v682_v20 = vsel %vm452_vm8, %v659_v13, %v637_v19 }
  0xc0   : > { %696 = vst.msk [vmem:[#allocation2 + $0x18] sm:$0xf] %vm456_vm9, %v682_v20 }
  0xc1   : > { %v710_v21 = vpop.permute.xlu1 %709 }
  0xc2   : > { %v1485_v24 = vld [vmem:[#allocation2 + $0x10] sm:$0xff]   ;;  %v641_v26 = vpop.permute.xlu0 %640  ;;  %v712_v28 = vsel %vm1825_vm6, 0, %v710_v21 }
  0xc3   : > { %v688_v27 = vsel %vm452_vm8, %v665_v25, %v641_v26  ;;  %1380 = vmatmul.mubr.msk.bf16.vlgmr.msra.gmra.mrb[0].mxu0 %vm777_vm10, %v1485_v24  ;;  %v1489_v23 = vld [vmem:[#allocation2 + $0x10] sm:$0xff]  }
  0xc4   : > { %698 = vst.msk [vmem:[#allocation2 + $0x20] sm:$0xf] %vm456_vm9, %v688_v27 }
  0xc5   : > { %v721_v29 = vpop.permute.xlu1 %720 }
  0xc6   : > { %v718_v30 = vpop.permute.xlu0 %717 }
  0xc7   : > { %v724_v31 = vsel %vm448_vm7, %v712_v28, %v718_v30  ;;  %v1486_v32 = vld [vmem:[#allocation2 + $0x14] sm:$0xff]  }
  0xc8   : > { %v726_v33 = vsel %vm452_vm8, %v724_v31, %v721_v29  ;;  %v1487_v34 = vld [vmem:[#allocation2 + $0x18] sm:$0xff]   ;;  %1363 = vmatprep.mubr.msk.bf16.mxu1 %vm777_vm10, %v1486_v32 }
  0xc9   : > { %729 = vst.msk [vmem:[#allocation2 + $0x24] sm:$0xf] %vm456_vm9, %v726_v33  ;;  %1383 = vmatprep.mubr.msk.bf16.mxu0 %vm777_vm10, %v1487_v34  ;;  %v1491_v37 = vld [vmem:[#allocation2 + $0x18] sm:$0xff]  }
  0xcb   : > { %v1488_v35 = vld [vmem:[#allocation2 + $0x1c] sm:$0xff]  }
  0xcc   : > { %1364 = vmatmul.mubr.msk.bf16.gmra.mrb[4].mxu1 %vm777_vm10, %v1488_v35 }
  0xcd   : > { %1373 = vmatprep.mubr.msk.bf16.mxu1 %vm777_vm10, %v1489_v23 }
  0xd0   : > { %v1490_v36 = vld [vmem:[#allocation2 + $0x20] sm:$0xff]  }
  0xd1   : > { %1384 = vmatmul.mubr.msk.bf16.gmra.mrb[4].mxu0 %vm777_vm10, %v1490_v36 }
  0xd8   : > { %1374 = vmatmul.mubr.msk.bf16.vlgmr.msra.gmra.mrb[4].mxu1 %vm777_vm10, %v1491_v37 }
 0x182   : > { %v1361_v38 = vpop.f32.mrb[0].mxu1 }
 0x183   : > { %v828_v39 = vpop.f32.mrb[1].mxu1 }
 0x184   : > { %v1362_v40 = vpop.f32.mrb[2].mxu1 }
 0x185   : > { %v831_v41 = vpop.f32.mrb[3].mxu1 }
 0x196   : > { %v1381_v43 = vpop.f32.mrb[0].mxu0 }
 0x197   : > { %v1389_v44 = vadd.f32 %v1381_v43, %v1361_v38  ;;  %v1050_v45 = vpop.f32.mrb[1].mxu0 }
 0x198   : > { %v1390_v46 = vadd.f32 %v1050_v45, %v828_v39  ;;  %v1382_v47 = vpop.f32.mrb[2].mxu0 }
 0x199   : > { %v1097_v48 = vadd.f32 %v1389_v44, %v1327_v42  ;;  %v1391_v49 = vadd.f32 %v1382_v47, %v1362_v40  ;;  %v1053_v50 = vpop.f32.mrb[3].mxu0 }
 0x19a   : > { %v1095_v51 = vadd.f32 %v1390_v46, %v1327_v42  ;;  %v1392_v52 = vadd.f32 %v1053_v50, %v831_v41 }
 0x19b   : > { %v1105_v53 = vmul.f32 0.1, %v1097_v48  ;;  %v1098_v54 = vadd.f32 %v1391_v49, %v1327_v42 }
 0x19c   : > { %v1103_v55 = vmul.f32 0.1, %v1095_v51  ;;  %v1096_v56 = vadd.f32 %v1392_v52, %v1327_v42 }
 0x19d   : > { %v1113_v57 = vmax.f32 %v1097_v48, %v1105_v53  ;;  %v1106_v59 = vmul.f32 0.1, %v1098_v54 }
 0x19e   : > { %v1111_v60 = vmax.f32 %v1095_v51, %v1103_v55  ;;  %v1104_v61 = vmul.f32 0.1, %v1096_v56 }
 0x19f   : > { %1122 = vst.msk [vmem:[%s1899_s29 + $0x10] sm:$0xff] %vm1119_vm11, %v1113_v57  ;;  %v1114_v62 = vmax.f32 %v1098_v54, %v1106_v59 }
 0x1a0   : > { %1120 = vst.msk [vmem:[%s1899_s29] sm:$0xff] %vm1119_vm11, %v1111_v60  ;;  %v1112_v63 = vmax.f32 %v1096_v56, %v1104_v61 }
 0x1a1   : > { %1123 = vst.msk [vmem:[%s1899_s29 + $0x18] sm:$0xff] %vm1119_vm11, %v1114_v62 }
 0x1a2   : > { %1121 = vst.msk [vmem:[%s1899_s29 + $0x8] sm:$0xff] %vm1119_vm11, %v1112_v63 }
 0x1a4   : > { %v1385_v0 = vpop.f32.mrb[4].mxu0 }
 0x1a5   : > { %v1066_v1 = vpop.f32.mrb[5].mxu0 }
 0x1a6   : > { %v1386_v2 = vpop.f32.mrb[6].mxu0 }
 0x1a7   : > { %v1069_v3 = vpop.f32.mrb[7].mxu0 }
 0x1ab   : > { %v1375_v4 = vpop.f32.mrb[4].mxu1 }
 0x1ac   : > { %v1393_v5 = vadd.f32 %v1385_v0, %v1375_v4  ;;  %v949_v6 = vpop.f32.mrb[5].mxu1 }
 0x1ad   : > { %v1394_v7 = vadd.f32 %v1066_v1, %v949_v6  ;;  %v1376_v8 = vpop.f32.mrb[6].mxu1 }
 0x1ae   : > { %v1101_v9 = vadd.f32 %v1393_v5, %v1327_v42  ;;  %v1395_v10 = vadd.f32 %v1386_v2, %v1376_v8  ;;  %v952_v58 = vpop.f32.mrb[7].mxu1 }
 0x1af   : > { %v1099_v11 = vadd.f32 %v1394_v7, %v1327_v42  ;;  %v1396_v12 = vadd.f32 %v1069_v3, %v952_v58 }
 0x1b0   : > { %v1109_v14 = vmul.f32 0.1, %v1101_v9  ;;  %v1102_v15 = vadd.f32 %v1395_v10, %v1327_v42 }
 0x1b1   : > { %v1107_v16 = vmul.f32 0.1, %v1099_v11  ;;  %v1100_v17 = vadd.f32 %v1396_v12, %v1327_v42 }
 0x1b2   : > { %v1117_v18 = vmax.f32 %v1101_v9, %v1109_v14  ;;  %v1110_v13 = vmul.f32 0.1, %v1102_v15 }
 0x1b3   : > { %v1115_v19 = vmax.f32 %v1099_v11, %v1107_v16  ;;  %v1108_v20 = vmul.f32 0.1, %v1100_v17 }
 0x1b4   : > { %1126 = vst.msk [vmem:[%s1899_s29 + $0x30] sm:$0xff] %vm1119_vm11, %v1117_v18  ;;  %v1118_v21 = vmax.f32 %v1102_v15, %v1110_v13 }
 0x1b5   : > { %1124 = vst.msk [vmem:[%s1899_s29 + $0x20] sm:$0xff] %vm1119_vm11, %v1115_v19  ;;  %v1116_v22 = vmax.f32 %v1100_v17, %v1108_v20 }
 0x1b6   : > { %1127 = vst.msk [vmem:[%s1899_s29 + $0x38] sm:$0xff] %vm1119_vm11, %v1118_v21 }
 0x1b7   : > { %1125 = vst.msk [vmem:[%s1899_s29 + $0x28] sm:$0xff] %vm1119_vm11, %v1116_v22 }
 0x1b8   : > { %1505 = shalt.err (!%p1502_p13)
}
 0x1b9   : > { %s1506_s7 = scalar_lea.hbm %s1916_s11, 1024  ;;  %s1510_s24 = scalar_lea.hbm %s1979_s5, 2048 }
 0x1ba   : > { %p1507_p0 = scmp.ne.s32.totalorder %s1916_s11, %s1506_s7  ;;  %p1511_p3 = scmp.lt.u32.totalorder %s1916_s11, %s1979_s5 }
 0x1bb   : > { %p1512_p5 = scmp.lt.u32.totalorder %s1510_s24, %s1506_s7  ;;  %p1514_p7 = scmp.lt.u32.totalorder %s1506_s7, %s1916_s11 }
 0x1bc   : > { %p1508_p1 = pnand %p1507_p0, %p1648_p4 }
 0x1bd   : > { %p1513_p6 = por %p1512_p5, %p1511_p3 }
 0x1be   : > { %p1509_p2 = pneg %p1508_p1 }
 0x1bf   : > { %p1515_p9 = por %p1514_p7, %p1513_p6 }
 0x1c1   : > { %p1516_p10 = pnand %p1515_p9, %p1509_p2 }
 0x1c3   : > { %1519 = shalt.err (!%p1516_p10)
}
 0x1c4   : > { %s1576_s13 = smov 128   ;;  %s1577_s10 = smov 8  }
 0x1c5   : > { %1409 = dma.vmem_to_hbm [thread:$0]  (%p1648_p4), %s1918_s8, 1024, %s1916_s11, %s1928_s21, %s1576_s13, %s1576_s13, %s1577_s10  }
 0x1c6 PF: > { %p1415_p11 = scmp.ge.s32.totalorder %s1570_s23, 2  ;;  %s1159_s9 = sand.u32 1, %s1550_s18  }
 0x1c7   : > { %s1160_s12 = scalar_lea.sflag [#allocation4], %s1159_s9 }
 0x1c8   : > { %p1412_p12 = pnand %p1415_p11, %p1655_p8 }
 0x1ca   : > { %1545 = dma.done.wait (!%p1412_p12), %s1160_s12, 1024  }
 0x1cb   : > { %1547 = vsyncadd (!%p1412_p12), %s1160_s12, 4294966272  ;;  %s18_s23 = sadd.s32 1, %s1570_s23   ;;  %s1987_s18 = smov %s1554_s19 }
 0x1cc   : > { %p15_p13 = scmp.ge.s32.totalorder %s18_s23, 4   ;;  %s1988_s19 = smov %s1558_s20 }
 0x1cd   : > { %s1989_s20 = smov %s1661_s6  ;;  %s1990_s21 = smov %s1566_s22 }
 0x1ce   : > { %s1991_s22 = smov %s1993_s26  ;;  %17 = sbr.rel (!%p15_p13) target bundleno = 4 (0x4), region = 86 }
 0x1d5   :  { %1165 = vsyncpa [#allocation4], 1 }
 0x1d6   :  { %1167 = vsyncpa [#allocation4 + $0x1], 1 }

</bundles_post_ra>
